<compile_context>
chip_gen: v6e
topology: v6e:2x2x1
jax: 0.10.0
libtpu: 0.0.40
codegen_flags: <defaults>
</compile_context>

<pallas_src>
import jax
import jax.numpy as jnp
from jax.experimental import pallas as pl
from jax.experimental.pallas import tpu as pltpu


def _round_up(x, m):
    return (x + m - 1) // m * m


def _vmem_capacity_bytes():
    try:
        cap = getattr(pltpu.get_tpu_info(), "vmem_capacity_bytes", None)
        if cap:
            return int(cap)
    except Exception:
        pass
    return 64 * 1024 * 1024  # conservative fallback (v7x physical VMEM per TC)


def _make_kernel(ts, hs_resident):
    def kernel(a_ref, hs_ref, hd_ref, wn_ref, ws_sum_ref, b_sum_ref,
               o_ref, agg_ref, deg_ref):
        r = pl.program_id(1)          # relation
        k = pl.program_id(2)          # src (reduction) tile
        nk = pl.num_programs(2)

        # Once per dst tile (first relation, first src tile): folded self path + summed bias.
        @pl.when(jnp.logical_and(r == 0, k == 0))
        def _():
            o_ref[...] = (jnp.dot(hd_ref[...], ws_sum_ref[...],
                                  preferred_element_type=jnp.float32)
                          + b_sum_ref[...])

        # Start of this relation's src reduction: zero the accumulators.
        @pl.when(k == 0)
        def _():
            agg_ref[...] = jnp.zeros_like(agg_ref)
            deg_ref[...] = jnp.zeros_like(deg_ref)

        a = a_ref[...]                                        # (td, ts) bf16, exact 0/1
        if hs_resident:
            start = pl.multiple_of(k * ts, ts)
            hs = hs_ref[pl.ds(start, ts), :]                  # slice of resident bf16 h_src
        else:
            hs = hs_ref[...]                                  # streamed bf16 h_src tile

        # bf16 x bf16 MXU matmul with f32 accumulation (full bf16 MXU rate).
        agg_ref[...] += jnp.dot(a, hs, preferred_element_type=jnp.float32)
        # In-kernel degree: row-sum of the 0/1 tile (overlaps the MXU work; exact in f32).
        deg_ref[...] += jnp.sum(a, axis=-1, keepdims=True, dtype=jnp.float32)

        # Per-relation epilogue: mean-normalize, project with W_neigh_r, accumulate into
        # the resident output block (HeteroGraphConv 'sum' aggregate).
        @pl.when(k == nk - 1)
        def _():
            inv_deg = pl.reciprocal(jnp.maximum(deg_ref[...], 1.0), approx=True)
            h_neigh = agg_ref[...] * inv_deg                  # (td, Dp_in) f32
            o_ref[...] = o_ref[...] + jnp.dot(h_neigh, wn_ref[...],
                                              preferred_element_type=jnp.float32)

    return kernel


def sage_conv_layer(adj, h_src, h_dst, w_self, w_neigh, bias,
                    *, tile_dst=512, tile_src=1024,
                    hs_resident_bytes=6 * 1024 * 1024):
    """adj: (R, N_dst, N_src) {0,1} (f32 or bf16); h_src: (N_src, D_in);
    h_dst: (N_dst, D_in); w_self/w_neigh: (R, D_in, D_out); bias: (R, 1, D_out)
    ->  (N_dst, D_out) f32."""
    R, N_dst, N_src = adj.shape
    D_in = h_src.shape[1]
    D_out = w_self.shape[2]

    # Lane-dense feature dims (multiples of 128).
    Dp_in = _round_up(D_in, 128)
    Dp_out = _round_up(D_out, 128)

    # dst / src tiles.
    nd_pad8 = _round_up(N_dst, 8)
    td = min(tile_dst, nd_pad8)
    # Keep >= 2 dst tiles when the problem allows, so v7x's two TensorCores both get
    # work on the "parallel" axis (harmless on single-TC v5e/v6e).
    if nd_pad8 <= td and nd_pad8 >= 16:
        td = _round_up((nd_pad8 + 1) // 2, 8)
    ts = min(tile_src, _round_up(N_src, 128))
    Np_dst = _round_up(N_dst, td)
    Np_src = _round_up(N_src, ts)

    # Keep h_src fully resident in VMEM when it fits (avoids re-streaming it once per
    # (dst tile, relation)).
    hs_resident = (Np_src * Dp_in * 2) <= hs_resident_bytes

    # --- Operand prep (casts / pads only when actually needed). -----------------------
    # TODO(synk): producing bf16 adjacency upstream would remove this cast pass entirely.
    adj_b = adj if adj.dtype == jnp.bfloat16 else adj.astype(jnp.bfloat16)
    if (N_dst, N_src) != (Np_dst, Np_src):
        adj_b = jnp.pad(adj_b, ((0, 0), (0, Np_dst - N_dst), (0, Np_src - N_src)))

    hs_b = h_src if h_src.dtype == jnp.bfloat16 else h_src.astype(jnp.bfloat16)
    if (N_src, D_in) != (Np_src, Dp_in):
        hs_b = jnp.pad(hs_b, ((0, Np_src - N_src), (0, Dp_in - D_in)))

    hd_p = h_dst.astype(jnp.float32)
    if (N_dst, D_in) != (Np_dst, Dp_in):
        hd_p = jnp.pad(hd_p, ((0, Np_dst - N_dst), (0, Dp_in - D_in)))

    # Algebraic folding over relations for the self path and bias
    # (HeteroGraphConv 'sum' aggregate + shared h_dst).
    w_self_sum = jnp.sum(w_self.astype(jnp.float32), axis=0)       # (D_in, D_out)
    bias_sum = jnp.sum(bias.astype(jnp.float32), axis=0)           # (1, D_out)

    wn_p = w_neigh.astype(jnp.float32)
    if (D_in, D_out) != (Dp_in, Dp_out):
        wn_p = jnp.pad(wn_p, ((0, 0), (0, Dp_in - D_in), (0, Dp_out - D_out)))
        w_self_sum = jnp.pad(w_self_sum, ((0, Dp_in - D_in), (0, Dp_out - D_out)))
        bias_sum = jnp.pad(bias_sum, ((0, 0), (0, Dp_out - D_out)))

    # --- VMEM budget: derived from the actual tile footprint, capped at 3/4 of the
    # chip's physical VMEM (v5e/v6e -> up to 96 MiB, v7x -> up to 48 MiB).
    est = (2 * td * ts * 2                                         # A tiles (bf16, dbl-buffered)
           + 2 * (Np_src if hs_resident else ts) * Dp_in * 2       # h_src (bf16)
           + 2 * td * Dp_in * 4                                    # h_dst (f32)
           + 2 * 2 * Dp_in * Dp_out * 4                            # W_neigh + W_self_sum (f32)
           + 2 * 8 * Dp_out * 4                                    # bias
           + 2 * td * Dp_out * 4                                   # output block (f32)
           + td * Dp_in * 4 + td * 128 * 4)                        # scratch (agg + deg)
    vmem_limit = int(min(max(est + (4 << 20), 32 << 20),
                         (3 * _vmem_capacity_bytes()) // 4))

    grid = (Np_dst // td, R, Np_src // ts)

    hs_spec = (pl.BlockSpec((Np_src, Dp_in), lambda i, r, k: (0, 0)) if hs_resident
               else pl.BlockSpec((ts, Dp_in), lambda i, r, k: (k, 0)))

    out = pl.pallas_call(
        _make_kernel(ts, hs_resident),
        out_shape=jax.ShapeDtypeStruct((Np_dst, Dp_out), jnp.float32),
        grid_spec=pltpu.PrefetchScalarGridSpec(
            num_scalar_prefetch=0,
            grid=grid,
            in_specs=[
                pl.BlockSpec((None, td, ts), lambda i, r, k: (r, i, k)),        # A_r tile (bf16)
                hs_spec,                                                        # h_src (bf16)
                pl.BlockSpec((td, Dp_in), lambda i, r, k: (i, 0)),              # h_dst tile (f32)
                pl.BlockSpec((None, Dp_in, Dp_out), lambda i, r, k: (r, 0, 0)), # W_neigh_r
                pl.BlockSpec((Dp_in, Dp_out), lambda i, r, k: (0, 0)),          # sum_r W_self_r
                pl.BlockSpec((1, Dp_out), lambda i, r, k: (0, 0)),              # sum_r b_r
            ],
            out_specs=pl.BlockSpec((td, Dp_out), lambda i, r, k: (i, 0)),
            scratch_shapes=[pltpu.VMEM((td, Dp_in), jnp.float32),               # agg accumulator
                            pltpu.VMEM((td, 1), jnp.float32)],                  # degree accumulator
        ),
        compiler_params=pltpu.CompilerParams(
            dimension_semantics=("parallel", "arbitrary", "arbitrary"),
            vmem_limit_bytes=vmem_limit,
        ),
    )(adj_b, hs_b, hd_p, wn_p, w_self_sum, bias_sum)

    return out[:N_dst, :D_out]


def reference(adj, h_src, h_dst, w_self, w_neigh, bias):
    deg = jnp.maximum(adj.sum(-1, keepdims=True), 1.0)             # (R, N_dst, 1)
    h_neigh = jnp.einsum("rds,sf->rdf", adj, h_src) / deg          # (R, N_dst, D_in)
    out = (jnp.einsum("df,rfo->rdo", h_dst, w_self)
           + jnp.einsum("rdf,rfo->rdo", h_neigh, w_neigh)
           + bias)
    return out.sum(0)


if __name__ == "__main__":
    # TODO(synk): feat_drop is identity here (inference semantics); training-mode dropout omitted.
    etypes = 3          # number of relations
    in_dim, out_dim = 32, 32
    n_src, n_dst = 16, 8

    key = jax.random.PRNGKey(0)
    k_adj, k_hs, k_hd, k_ws, k_wn, k_b = jax.random.split(key, 6)

    adj = (jax.random.uniform(k_adj, (etypes, n_dst, n_src)) < 0.3).astype(jnp.float32)
    h_src = jax.random.normal(k_hs, (n_src, in_dim), jnp.float32)
    h_dst = jax.random.normal(k_hd, (n_dst, in_dim), jnp.float32)

    # Deterministic synthetic parameters (one SAGEConv per relation).
    w_self = jax.random.normal(k_ws, (etypes, in_dim, out_dim), jnp.float32) * 0.1
    w_neigh = jax.random.normal(k_wn, (etypes, in_dim, out_dim), jnp.float32) * 0.1
    bias = jax.random.normal(k_b, (etypes, 1, out_dim), jnp.float32) * 0.01

    out = sage_conv_layer(adj, h_src, h_dst, w_self, w_neigh, bias)
    out = jax.block_until_ready(out)

    ref = reference(adj, h_src, h_dst, w_self, w_neigh, bias)
    assert out.shape == (n_dst, out_dim)
    # Tolerance sized for the bf16 rounding of h_src (adjacency 0/1 is exact in bf16;
    # weights / self path / accumulation stay in f32).
    assert jnp.allclose(out, ref, atol=2e-2, rtol=2e-2), float(jnp.max(jnp.abs(out - ref)))

    print("KERNEL_OK")
</pallas_src>

<mosaic_0001>
module attributes {stable_mosaic.version = 11 : i64} {
  func.func @kernel(%arg0: i32, %arg1: i32, %arg2: i32, %arg3: memref<1x8x128xbf16, #tpu.memory_space<vmem>>, %arg4: memref<128x128xbf16, #tpu.memory_space<vmem>>, %arg5: memref<8x128xf32, #tpu.memory_space<vmem>>, %arg6: memref<1x128x128xf32, #tpu.memory_space<vmem>>, %arg7: memref<128x128xf32, #tpu.memory_space<vmem>>, %arg8: memref<1x128xf32, #tpu.memory_space<vmem>>, %arg9: memref<8x128xf32, #tpu.memory_space<vmem>>, %arg10: memref<8x128xf32, #tpu.memory_space<vmem>>, %arg11: memref<8x1xf32, #tpu.memory_space<vmem>>) attributes {dimension_semantics = [#tpu.dimension_semantics<parallel>, #tpu.dimension_semantics<arbitrary>, #tpu.dimension_semantics<arbitrary>], iteration_bounds = array<i64: 1, 3, 1>, scalar_prefetch = 0 : i64, scratch_operands = 2 : i64, tpu.core_type = #tpu.core_type<tc>, window_params = [{transform_indices = @transform_0, window_bounds = array<i64: 1, 8, 128>}, {pipeline_mode = #tpu.pipeline_mode<synchronous>, transform_indices = @transform_1, window_bounds = array<i64: 128, 128>}, {transform_indices = @transform_2, window_bounds = array<i64: 8, 128>}, {transform_indices = @transform_3, window_bounds = array<i64: 1, 128, 128>}, {pipeline_mode = #tpu.pipeline_mode<synchronous>, transform_indices = @transform_4, window_bounds = array<i64: 128, 128>}, {pipeline_mode = #tpu.pipeline_mode<synchronous>, transform_indices = @transform_5, window_bounds = array<i64: 1, 128>}, {transform_indices = @transform_6, window_bounds = array<i64: 8, 128>}]} {
    %c0_i32 = arith.constant 0 : i32
    %0 = arith.cmpi eq, %arg1, %c0_i32 : i32
    %c0_i32_0 = arith.constant 0 : i32
    %1 = arith.cmpi eq, %arg2, %c0_i32_0 : i32
    %2 = arith.andi %0, %1 : i1
    %3 = arith.extui %2 : i1 to i32
    %c0_i32_1 = arith.constant 0 : i32
    %4 = arith.cmpi ne, %3, %c0_i32_1 : i32
    scf.if %4 {
      %c0_18 = arith.constant 0 : index
      %c0_19 = arith.constant 0 : index
      %27 = vector.load %arg5[%c0_18, %c0_19] : memref<8x128xf32, #tpu.memory_space<vmem>>, vector<8x128xf32>
      %c0_20 = arith.constant 0 : index
      %c0_21 = arith.constant 0 : index
      %28 = vector.load %arg7[%c0_20, %c0_21] : memref<128x128xf32, #tpu.memory_space<vmem>>, vector<128x128xf32>
      %cst_22 = arith.constant dense<0.000000e+00> : vector<8x128xf32>
      %29 = tpu.matmul %27, %28, %cst_22 {dimension_numbers = #tpu.dot_dimension_numbers<[1], [0], [0], [1], [0, 0, 1, 1], [], []>} : vector<8x128xf32>, vector<128x128xf32>, vector<8x128xf32> -> vector<8x128xf32>
      %c0_23 = arith.constant 0 : index
      %c0_24 = arith.constant 0 : index
      %30 = vector.load %arg8[%c0_23, %c0_24] : memref<1x128xf32, #tpu.memory_space<vmem>>, vector<1x128xf32>
      %31 = vector.broadcast %30 : vector<1x128xf32> to vector<8x128xf32>
      %32 = arith.addf %29, %31 : vector<8x128xf32>
      %c0_25 = arith.constant 0 : index
      %c0_26 = arith.constant 0 : index
      %33 = vector.load %arg9[%c0_25, %c0_26] : memref<8x128xf32, #tpu.memory_space<vmem>>, vector<8x128xf32>
      tpu.vector_store %arg9[%c0_25, %c0_26], %32 {strides = array<i32>} : memref<8x128xf32, #tpu.memory_space<vmem>>, vector<8x128xf32>,
    } else {
    }
    %c0_i32_2 = arith.constant 0 : i32
    %5 = arith.cmpi eq, %arg2, %c0_i32_2 : i32
    %6 = arith.extui %5 : i1 to i32
    %c0_i32_3 = arith.constant 0 : i32
    %7 = arith.cmpi ne, %6, %c0_i32_3 : i32
    scf.if %7 {
      %cst_18 = arith.constant 0.000000e+00 : f32
      %27 = vector.broadcast %cst_18 : f32 to vector<8x128xf32>
      %c0_19 = arith.constant 0 : index
      %c0_20 = arith.constant 0 : index
      %28 = vector.load %arg10[%c0_19, %c0_20] : memref<8x128xf32, #tpu.memory_space<vmem>>, vector<8x128xf32>
      tpu.vector_store %arg10[%c0_19, %c0_20], %27 {strides = array<i32>} : memref<8x128xf32, #tpu.memory_space<vmem>>, vector<8x128xf32>,
      %cst_21 = arith.constant 0.000000e+00 : f32
      %29 = vector.broadcast %cst_21 : f32 to vector<8x1xf32>
      %c0_22 = arith.constant 0 : index
      %c0_23 = arith.constant 0 : index
      %30 = vector.load %arg11[%c0_22, %c0_23] : memref<8x1xf32, #tpu.memory_space<vmem>>, vector<8x1xf32>
      tpu.vector_store %arg11[%c0_22, %c0_23], %29 {strides = array<i32>} : memref<8x1xf32, #tpu.memory_space<vmem>>, vector<8x1xf32>,
    } else {
    }
    %c0 = arith.constant 0 : index
    %c0_4 = arith.constant 0 : index
    %c0_5 = arith.constant 0 : index
    %8 = vector.load %arg3[%c0, %c0_4, %c0_5] : memref<1x8x128xbf16, #tpu.memory_space<vmem>>, vector<1x8x128xbf16>
    %9 = vector.shape_cast %8 : vector<1x8x128xbf16> to vector<8x128xbf16>
    %c128_i32 = arith.constant 128 : i32
    %10 = arith.muli %arg2, %c128_i32 : i32
    %11 = tpu.assume_multiple %10, 128 : i32
    %12 = arith.index_cast %11 : i32 to index
    %c0_6 = arith.constant 0 : index
    %13 = vector.load %arg4[%12, %c0_6] : memref<128x128xbf16, #tpu.memory_space<vmem>>, vector<128x128xbf16>
    %c0_7 = arith.constant 0 : index
    %c0_8 = arith.constant 0 : index
    %14 = vector.load %arg10[%c0_7, %c0_8] : memref<8x128xf32, #tpu.memory_space<vmem>>, vector<8x128xf32>
    %cst = arith.constant dense<0.000000e+00> : vector<8x128xf32>
    %15 = tpu.matmul %9, %13, %cst {dimension_numbers = #tpu.dot_dimension_numbers<[1], [0], [0], [1], [0, 0, 1, 1], [], []>} : vector<8x128xbf16>, vector<128x128xbf16>, vector<8x128xf32> -> vector<8x128xf32>
    %16 = arith.addf %14, %15 : vector<8x128xf32>
    %c0_9 = arith.constant 0 : index
    %c0_10 = arith.constant 0 : index
    %17 = vector.load %arg10[%c0_9, %c0_10] : memref<8x128xf32, #tpu.memory_space<vmem>>, vector<8x128xf32>
    tpu.vector_store %arg10[%c0_9, %c0_10], %16 {strides = array<i32>} : memref<8x128xf32, #tpu.memory_space<vmem>>, vector<8x128xf32>,
    %c0_11 = arith.constant 0 : index
    %c0_12 = arith.constant 0 : index
    %18 = vector.load %arg11[%c0_11, %c0_12] : memref<8x1xf32, #tpu.memory_space<vmem>>, vector<8x1xf32>
    %19 = arith.extf %9 : vector<8x128xbf16> to vector<8x128xf32>
    %cst_13 = arith.constant dense<0.000000e+00> : vector<8xf32>
    %20 = vector.multi_reduction <add>, %19, %cst_13 [1] : vector<8x128xf32> to vector<8xf32>
    %21 = vector.shape_cast %20 : vector<8xf32> to vector<8x1xf32>
    %22 = arith.addf %18, %21 : vector<8x1xf32>
    %c0_14 = arith.constant 0 : index
    %c0_15 = arith.constant 0 : index
    %23 = vector.load %arg11[%c0_14, %c0_15] : memref<8x1xf32, #tpu.memory_space<vmem>>, vector<8x1xf32>
    tpu.vector_store %arg11[%c0_14, %c0_15], %22 {strides = array<i32>} : memref<8x1xf32, #tpu.memory_space<vmem>>, vector<8x1xf32>,
    %c0_i32_16 = arith.constant 0 : i32
    %24 = arith.cmpi eq, %arg2, %c0_i32_16 : i32
    %25 = arith.extui %24 : i1 to i32
    %c0_i32_17 = arith.constant 0 : i32
    %26 = arith.cmpi ne, %25, %c0_i32_17 : i32
    scf.if %26 {
      %c0_18 = arith.constant 0 : index
      %c0_19 = arith.constant 0 : index
      %27 = vector.load %arg11[%c0_18, %c0_19] : memref<8x1xf32, #tpu.memory_space<vmem>>, vector<8x1xf32>
      %cst_20 = arith.constant 1.000000e+00 : f32
      %28 = vector.broadcast %cst_20 : f32 to vector<8x1xf32>
      %29 = arith.maximumf %27, %28 : vector<8x1xf32>
      %30 = tpu.reciprocal %29 {approx = true} : vector<8x1xf32> -> vector<8x1xf32>
      %c0_21 = arith.constant 0 : index
      %c0_22 = arith.constant 0 : index
      %31 = vector.load %arg10[%c0_21, %c0_22] : memref<8x128xf32, #tpu.memory_space<vmem>>, vector<8x128xf32>
      %32 = vector.broadcast %30 : vector<8x1xf32> to vector<8x128xf32>
      %33 = arith.mulf %31, %32 : vector<8x128xf32>
      %c0_23 = arith.constant 0 : index
      %c0_24 = arith.constant 0 : index
      %34 = vector.load %arg9[%c0_23, %c0_24] : memref<8x128xf32, #tpu.memory_space<vmem>>, vector<8x128xf32>
      %c0_25 = arith.constant 0 : index
      %c0_26 = arith.constant 0 : index
      %c0_27 = arith.constant 0 : index
      %35 = vector.load %arg6[%c0_25, %c0_26, %c0_27] : memref<1x128x128xf32, #tpu.memory_space<vmem>>, vector<1x128x128xf32>
      %36 = vector.shape_cast %35 : vector<1x128x128xf32> to vector<128x128xf32>
      %cst_28 = arith.constant dense<0.000000e+00> : vector<8x128xf32>
      %37 = tpu.matmul %33, %36, %cst_28 {dimension_numbers = #tpu.dot_dimension_numbers<[1], [0], [0], [1], [0, 0, 1, 1], [], []>} : vector<8x128xf32>, vector<128x128xf32>, vector<8x128xf32> -> vector<8x128xf32>
      %38 = arith.addf %34, %37 : vector<8x128xf32>
      %c0_29 = arith.constant 0 : index
      %c0_30 = arith.constant 0 : index
      %39 = vector.load %arg9[%c0_29, %c0_30] : memref<8x128xf32, #tpu.memory_space<vmem>>, vector<8x128xf32>
      tpu.vector_store %arg9[%c0_29, %c0_30], %38 {strides = array<i32>} : memref<8x128xf32, #tpu.memory_space<vmem>>, vector<8x128xf32>,
    } else {
    }
    return
  }
  func.func @transform_0(%arg0: i32, %arg1: i32, %arg2: i32) -> (i32, i32, i32) {
    %c0_i32 = arith.constant 0 : i32
    return %arg1, %arg0, %arg2 : i32, i32, i32
  }
  func.func @transform_1(%arg0: i32, %arg1: i32, %arg2: i32) -> (i32, i32) {
    %c0_i32 = arith.constant 0 : i32
    %c0_i32_0 = arith.constant 0 : i32
    %c0_i32_1 = arith.constant 0 : i32
    return %c0_i32, %c0_i32_0 : i32, i32
  }
  func.func @transform_2(%arg0: i32, %arg1: i32, %arg2: i32) -> (i32, i32) {
    %c0_i32 = arith.constant 0 : i32
    %c0_i32_0 = arith.constant 0 : i32
    return %arg0, %c0_i32 : i32, i32
  }
  func.func @transform_3(%arg0: i32, %arg1: i32, %arg2: i32) -> (i32, i32, i32) {
    %c0_i32 = arith.constant 0 : i32
    %c0_i32_0 = arith.constant 0 : i32
    %c0_i32_1 = arith.constant 0 : i32
    return %arg1, %c0_i32, %c0_i32_0 : i32, i32, i32
  }
  func.func @transform_4(%arg0: i32, %arg1: i32, %arg2: i32) -> (i32, i32) {
    %c0_i32 = arith.constant 0 : i32
    %c0_i32_0 = arith.constant 0 : i32
    %c0_i32_1 = arith.constant 0 : i32
    return %c0_i32, %c0_i32_0 : i32, i32
  }
  func.func @transform_5(%arg0: i32, %arg1: i32, %arg2: i32) -> (i32, i32) {
    %c0_i32 = arith.constant 0 : i32
    %c0_i32_0 = arith.constant 0 : i32
    %c0_i32_1 = arith.constant 0 : i32
    return %c0_i32, %c0_i32_0 : i32, i32
  }
  func.func @transform_6(%arg0: i32, %arg1: i32, %arg2: i32) -> (i32, i32) {
    %c0_i32 = arith.constant 0 : i32
    %c0_i32_0 = arith.constant 0 : i32
    return %arg0, %c0_i32 : i32, i32
  }
}

</mosaic_0001>

<bundles_post_ra>
// kernel: tpu_custom_call.1
= control target key start
LH: loop header
LB: loop body
LE: loop exit
PB: predicated region body
PF: predicated region fallthrough
CT: control target
= control target key end

     0   :  { %s1621_s0 = inlined_call_operand.hbm [shape: bf16[3,8,128], index: 0, kind: input, shape index: {}]   ;;  %s1622_s1 = inlined_call_operand.hbm [shape: bf16[128,128], index: 1, kind: input, shape index: {}]   ;;  %s1623_s2 = inlined_call_operand.hbm [shape: f32[8,128], index: 2, kind: input, shape index: {}]   ;;  %s1624_s3 = inlined_call_operand.hbm [shape: f32[3,128,128], index: 3, kind: input, shape index: {}]   ;;  %s1625_s4 = inlined_call_operand.hbm [shape: f32[128,128], index: 4, kind: input, shape index: {}]   ;;  %s1626_s5 = inlined_call_operand.vmem [shape: f32[1,128], index: 5, kind: input, shape index: {}]   ;;  %s1627_s6 = inlined_call_operand.hbm [shape: f32[8,128], index: 6, kind: output, shape index: {}]  }
   0x1   :  { %1631 = sst [smem:[#allocation19_spill]] %s1621_s0 }
   0x2   :  { %1632 = sst [smem:[#allocation20_spill]] %s1622_s1 }
   0x3   :  { %11 = vsyncpa [#allocation5], 0 }
   0x4   :  { %13 = vsyncpa [#allocation5 + $0x1], 0 }
   0x5   :  { %14 = vsyncpa [#allocation8], 0 }
   0x6   :  { %15 = vsyncpa [#allocation11], 0 }
   0x7   :  { %17 = vsyncpa [#allocation11 + $0x1], 0 }
   0x8   :  { %18 = vsyncpa [#allocation6], 0  ;;  %s1393_s21 = smov 0   ;;  %s1395_s22 = smov 0  }
   0x9   :  { %s1397_s23 = smov 0   ;;  %s1399_s24 = smov 0  }
   0xa   :  { %s1401_s25 = smov 0   ;;  %s1403_s26 = smov 0  }
   0xb LB: > { %s1422_s27 = sadd.s32 4294967295, %s1341_s26   ;;  %p67_p0 = scmp.ne.s32.totalorder %s1325_s22, %s1321_s21  ;;  %s1341_s26 = sphi %s1403_s26, %s24_s26   ;;  %s1337_s25 = sphi %s1401_s25, %s1649_s25   ;;  %s1333_s24 = sphi %s1399_s24, %s1648_s24   ;;  %s1329_s23 = sphi %s1397_s23, %s1647_s23   ;;  %s1325_s22 = sphi %s1395_s22, %s1646_s22   ;;  %s1321_s21 = sphi %s1393_s21, %s1645_s21  }
   0xc   : > { %p1628_p1 = scmp.eq.s32.totalorder %s1422_s27, 0  ;;  %p834_p2 = scmp.ge.s32.totalorder %s1341_s26, 1 }
   0xd   : > { %p219_p3 = scmp.lt.s32.totalorder %s1341_s26, 4  ;;  %s1343_s30 = smov [#allocation7]  }
   0xe   : > { %p1430_p4 = por %p1628_p1, %p67_p0  ;;  %s231_s7 = sshll.u32 %s1343_s30, 4  ;;  %s232_s7 = int_to_ptr.vmem [resolvable:$true] %s231_s7 }
   0xf   : > { %p1434_p5 = pnand %p834_p2, %p219_p3  ;;  %s1344_s9 = smov [#allocation12]  }
  0x10   : > { %s257_s10 = sshll.u32 %s1344_s9, 4  ;;  %s1128_s11 = scalar_lea.vmem %s232_s7, 1024  ;;  %s258_s10 = int_to_ptr.vmem [resolvable:$true] %s257_s10 }
  0x11   : > { %p1019_p6 = pneg %p1434_p5  ;;  %p1129_p9 = scmp.ne.s32.totalorder %s232_s7, %s1128_s11 }
  0x12   : > { %p1136_p12 = scmp.lt.s32.totalorder %s232_s7, %s232_s7  ;;  %p1137_p13 = scmp.lt.s32.totalorder %s1128_s11, %s1128_s11 }
  0x13   : > { %p1442_p7 = pnand %p1019_p6, %p1628_p1 }
  0x14   : > { %p1138_p0 = por %p1137_p13, %p1136_p12 }
  0x15   : > { %p1119_p8 = pneg %p1442_p7 }
  0x17   : > { %p1131_p10 = pnand %p1129_p9, %p1119_p8 }
  0x19   : > { %p1132_p11 = pneg %p1131_p10 }
  0x1b   : > { %p1139_p2 = pnand %p1138_p0, %p1132_p11 }
  0x1d   : > { %1142 = shalt.err (!%p1139_p2)
}
  0x1e   : > { %s1345_s12 = smov 64   ;;  %s1346_s13 = smov 4  }
  0x1f   : > { %s1636_s1 = sld [smem:[#allocation20_spill]]  ;;  %s1154_s16 = scalar_lea.vmem %s258_s10, 2048 }
  0x20   : > { %p1155_p3 = scmp.ne.s32.totalorder %s258_s10, %s1154_s16  ;;  %p1162_p10 = scmp.lt.s32.totalorder %s258_s10, %s258_s10 }
  0x21   : > { %p1163_p1 = scmp.lt.s32.totalorder %s1154_s16, %s1154_s16 }
  0x22   : > { %p1157_p6 = pnand %p1155_p3, %p1119_p8 }
  0x23   : > { %p1164_p12 = por %p1163_p1, %p1162_p10 }
  0x24   : > { %p1158_p9 = pneg %p1157_p6 }
  0x25   : > { %1022 = dma.hbm_to_vmem [thread:$0]  (!%p1442_p7), %s1636_s1, 1024, %s232_s7, [#allocation8], %s1345_s12, %s1345_s12, %s1346_s13  }
  0x26   : > { %p1165_p11 = pnand %p1164_p12, %p1158_p9 }
  0x28   : > { %1168 = shalt.err (!%p1165_p11)
}
  0x29   : > { %s1629_s17 = smov 128   ;;  %s1630_s18 = smov 8  }
  0x2a   : > { %1028 = dma.hbm_to_vmem [thread:$0]  (!%p1442_p7), %s1625_s4, 2048, %s258_s10, [#allocation11], %s1629_s17, %s1629_s17, %s1630_s18  }
  0x2b   : > { %s1349_s21 = smov [#allocation9]  }
  0x2c   : > { %s247_s30 = sshll.u32 %s1349_s21, 4  ;;  %s248_s30 = int_to_ptr.vmem [resolvable:$true] %s247_s30 }
  0x2d   : > { %s1180_s7 = scalar_lea.vmem %s248_s30, 128  ;;  %p1188_p2 = scmp.lt.s32.totalorder %s248_s30, %s248_s30 }
  0x2e   : > { %p1181_p13 = scmp.ne.s32.totalorder %s248_s30, %s1180_s7  ;;  %p1189_p3 = scmp.lt.s32.totalorder %s1180_s7, %s1180_s7 }
  0x30   : > { %p1183_p1 = pnand %p1181_p13, %p1119_p8  ;;  %p1190_p6 = por %p1189_p3, %p1188_p2 }
  0x32   : > { %p1184_p0 = pneg %p1183_p1 }
  0x34   : > { %p1191_p9 = pnand %p1190_p6, %p1184_p0 }
  0x36   : > { %1194 = shalt.err (!%p1191_p9)
}
  0x37   : > { %1025 = dma.hbm_to_vmem [thread:$0]  (!%p1442_p7), %s1623_s2, 128, %s248_s30, [#allocation8]  }
  0x38   : > { %s39_s10 = sadd.s32 1, %s1337_s25  ;;  %s54_s12 = sadd.s32 1, %s1329_s23 }
  0x39   : > { %p41_p8 = scmp.ge.s32.totalorder %s39_s10, 3  ;;  %p61_p10 = scmp.ne.s32.totalorder %s1329_s23, %s1325_s22 }
  0x3a   : > { %p62_p12 = scmp.eq.s32.totalorder %s1341_s26, 0  ;;  %p1039_p13 = scmp.lt.s32.totalorder %s1341_s26, 3 }
  0x3b   : > { %s1651_s10 = smov (%p41_p8, %s39_s10), 0  ;;  %s274_s13 = sand.u32 1, %s1329_s23  }
  0x3c   : > { %p63_p11 = por %p62_p12, %p61_p10  ;;  %s47_s8 = ssub.s32 %s1337_s25, %s1651_s10 }
  0x3d   : > { %p52_p1 = scmp.eq.s32.totalorder %s47_s8, 0  ;;  %s839_s14 = sshll.u32 %s274_s13, 2 }
  0x3e   : > { %s840_s15 = sshll.u32 %s1337_s25, 6  ;;  %s1637_s0 = sld [smem:[#allocation19_spill]] }
  0x3f   : > { %s1488_s16 = scalar_select %p52_p1, %s1329_s23, %s54_s12  }
  0x40   : > { %s278_s30 = scalar_lea.vmem [#allocation4], %s839_s14  ;;  %p1493_p7 = pnand %p1039_p13, %p63_p11 }
  0x41   : > { %s287_s7 = sshll.u32 %s278_s30, 4  ;;  %s841_s11 = sshll.u32 %s274_s13, 7  ;;  %s288_s7 = int_to_ptr.vmem [resolvable:$true] %s287_s7 }
  0x42   : > { %s275_s17 = scalar_lea.sflag [#allocation5], %s274_s13  ;;  %p1197_p0 = pneg %p1493_p7 }
  0x43   : > { %s1208_s8 = scalar_lea.vmem %s288_s7, 64  ;;  %s1350_s12 = smov [#allocation4]  }
  0x44   : > { %s285_s21 = scalar_lea.hbm %s1637_s0, %s840_s15  ;;  %p1209_p2 = scmp.ne.s32.totalorder %s288_s7, %s1208_s8 }
  0x45   : > { %s1213_s14 = sshll.u32 %s1350_s12, 4  ;;  %s1214_s14 = int_to_ptr.vmem [resolvable:$false] %s1213_s14 }
  0x46   : > { %p1211_p3 = pnand %p1209_p2, %p1197_p0  ;;  %s1215_s15 = scalar_lea.vmem %s1214_s14, 128 }
  0x47   : > { %p1216_p9 = scmp.lt.s32.totalorder %s288_s7, %s1214_s14  ;;  %p1217_p8 = scmp.lt.s32.totalorder %s1215_s15, %s1208_s8 }
  0x48   : > { %p1212_p6 = pneg %p1211_p3 }
  0x49   : > { %p1218_p10 = por %p1217_p8, %p1216_p9 }
  0x4b   : > { %p1219_p12 = pnand %p1218_p10, %p1212_p6 }
  0x4d   : > { %1222 = shalt.err (!%p1219_p12)
}
  0x4e   : > { %1032 = dma.hbm_to_vmem [thread:$0]  (!%p1493_p7), %s285_s21, 64, %s288_s7, %s275_s17  }
  0x4f   : > { %s864_s13 = sshll.u32 %s1337_s25, 11  ;;  %s298_s19 = scalar_lea.vmem [#allocation10], %s841_s11 }
  0x50   : > { %s305_s20 = sshll.u32 %s298_s19, 4  ;;  %s294_s30 = sand.u32 1, %s1341_s26   ;;  %s306_s20 = int_to_ptr.vmem [resolvable:$true] %s305_s20 }
  0x51   : > { %s304_s0 = scalar_lea.hbm %s1624_s3, %s864_s13  ;;  %s295_s14 = scalar_lea.sflag [#allocation11], %s294_s30 }
  0x52   : > { %s1236_s8 = scalar_lea.vmem %s306_s20, 2048  ;;  %s1351_s15 = smov [#allocation10]  }
  0x53   : > { %p1237_p11 = scmp.ne.s32.totalorder %s306_s20, %s1236_s8  ;;  %s1241_s1 = sshll.u32 %s1351_s15, 4  ;;  %s1242_s1 = int_to_ptr.vmem [resolvable:$false] %s1241_s1 }
  0x54   : > { %s1243_s17 = scalar_lea.vmem %s1242_s1, 4096  ;;  %p1244_p2 = scmp.lt.s32.totalorder %s306_s20, %s1242_s1 }
  0x55   : > { %p1239_p13 = pnand %p1237_p11, %p1197_p0  ;;  %p1245_p3 = scmp.lt.s32.totalorder %s1243_s17, %s1236_s8 }
  0x57   : > { %p1240_p1 = pneg %p1239_p13  ;;  %p1246_p6 = por %p1245_p3, %p1244_p2 }
  0x59   : > { %p1247_p9 = pnand %p1246_p6, %p1240_p1 }
  0x5b   : > { %1250 = shalt.err (!%p1247_p9)
}
  0x5c   : > { %s1639_s18 = smov 8   ;;  %s1640_s21 = smov 128  }
  0x5d   : > { %1035 = dma.hbm_to_vmem [thread:$0]  (!%p1493_p7), %s304_s0, 2048, %s306_s20, %s295_s14, %s1640_s21, %s1640_s21, %s1639_s18  }
  0x5e   : > { %317 = sbr.rel (%p1434_p5) target bundleno = 832 (0x340), region = 44  ;;  %s319_s7 = sand.u32 (!%p1434_p5), 1, %s1325_s22  }
  0x5f   : > { %s845_s11 = sshll.u32 (!%p1434_p5), %s319_s7, 2  ;;  %s320_s13 = scalar_lea.sflag (!%p1434_p5), [#allocation5], %s319_s7 }
  0x60   : > { %s1520_s19 = scalar_lea.vmem (!%p1434_p5), [#allocation4], %s845_s11 }
  0x63   : > { %1300 = dma.done.wait (%p1430_p4), %s320_s13, 64  }
  0x64   : > { %1302 = vsyncadd (%p1430_p4), %s320_s13, 4294967232  ;;  %p1641_p0 = scmp.eq.s32.totalorder %s1422_s27, 0 }
  0x66   : > { %1304 = dma.done.wait (%p1641_p0), [#allocation8], 1152   ;;  %p1642_p7 = pmov %p1641_p0 }
  0x67   : > { %s336_s0 = sand.u32 1, %s1422_s27   ;;  %s848_s1 = sshll.u32 %s319_s7, 7 }
  0x68   : > { %1306 = vsyncadd (%p1642_p7), [#allocation8], 4294966144  ;;  %s337_s29 = scalar_lea.sflag [#allocation11], %s336_s0  ;;  %s1531_s9 = scalar_lea.vmem [#allocation10], %s848_s1 }
  0x69   : > { %1308 = dma.done.wait (%p1430_p4), %s337_s29, 2048  }
  0x6a   : > { %1310 = vsyncadd (%p1430_p4), %s337_s29, 4294965248  ;;  %p1643_p5 = pmov %p1641_p0 }
  0x6b   : > { %p1644_p8 = pmov %p1641_p0 }
  0x6c   : > { %1312 = dma.done.wait (%p1643_p5), [#allocation11], 2048  }
  0x6d   : > { %1314 = vsyncadd (%p1644_p8), [#allocation11], 4294965248  ;;  %p374_p10 = scmp.eq.s32.totalorder %s1333_s24, 0 }
  0x6e   : > { %v396_v0 = vld [vmem:[#allocation12 + $0x78] sm:$0xff] (%p374_p10)  ;;  %v1352_v1 = vmov (%p374_p10), 0.0   ;;  %v395_v2 = vld [vmem:[#allocation12 + $0x70] sm:$0xff] (%p374_p10)  ;;  %vm1353_vm0 = vmmov (%p374_p10), 0   ;;  %v394_v3 = vld [vmem:[#allocation12 + $0x68] sm:$0xff] (%p374_p10) }
  0x6f   : > { %379 = sbr.rel (!%p374_p10) target bundleno = 339 (0x153), region = 68  ;;  %909 = vmatprep.subr.mxu0 (%p374_p10), %v1352_v1  ;;  %941 = vmatprep.mubr.msk.f32.mxu0 (%p374_p10), %vm1353_vm0, %v1352_v1  ;;  %v393_v4 = vld [vmem:[#allocation12 + $0x60] sm:$0xff] (%p374_p10)  ;;  %v392_v5 = vld [vmem:[#allocation12 + $0x58] sm:$0xff] (%p374_p10)  ;;  %v391_v6 = vld [vmem:[#allocation12 + $0x50] sm:$0xff] (%p374_p10) }
  0x70   : > { %910 = vmatpush3.msra.mxu0 (%p374_p10), %v396_v0  ;;  %v390_v7 = vld [vmem:[#allocation12 + $0x48] sm:$0xff] (%p374_p10)  ;;  %v389_v8 = vld [vmem:[#allocation12 + $0x40] sm:$0xff] (%p374_p10)  ;;  %v388_v9 = vld [vmem:[#allocation12 + $0x38] sm:$0xff] (%p374_p10) }
  0x71   : > { %911 = vmatprep.subr.mxu0 (%p374_p10), %v1352_v1  ;;  %v387_v10 = vld [vmem:[#allocation12 + $0x30] sm:$0xff] (%p374_p10)  ;;  %v386_v11 = vld [vmem:[#allocation12 + $0x28] sm:$0xff] (%p374_p10)  ;;  %v385_v12 = vld [vmem:[#allocation12 + $0x20] sm:$0xff] (%p374_p10) }
  0x72   : > { %912 = vmatpush3.msra.mxu0 (%p374_p10), %v395_v2  ;;  %v384_v13 = vld [vmem:[#allocation12 + $0x18] sm:$0xff] (%p374_p10)  ;;  %v383_v14 = vld [vmem:[#allocation12 + $0x10] sm:$0xff] (%p374_p10)  ;;  %v382_v15 = vld [vmem:[#allocation12 + $0x8] sm:$0xff] (%p374_p10) }
  0x73   : > { %913 = vmatprep.subr.mxu0 (%p374_p10), %v1352_v1  ;;  %v381_v16 = vld [vmem:[#allocation12] sm:$0xff] (%p374_p10)  ;;  %v380_v17 = vld [vmem:[#allocation9] sm:$0xff] (%p374_p10)  ;;  %v851_v18 = vld [vmem:[%s1626_s5] ss:$0 sm:$0xff] (%p374_p10) }
  0x74   : > { %914 = vmatpush3.msra.mxu0 %v394_v3 }
  0x75   : > { %915 = vmatprep.subr.mxu0 %v1352_v1 }
  0x76   : > { %916 = vmatpush3.msra.mxu0 %v393_v4 }
  0x77   : > { %917 = vmatprep.subr.mxu0 %v1352_v1 }
  0x78   : > { %918 = vmatpush3.msra.mxu0 %v392_v5 }
  0x79   : > { %919 = vmatprep.subr.mxu0 %v1352_v1 }
  0x7a   : > { %920 = vmatpush3.msra.mxu0 %v391_v6 }
  0x7b   : > { %921 = vmatprep.subr.mxu0 %v1352_v1 }
  0x7c   : > { %922 = vmatpush3.msra.mxu0 %v390_v7 }
  0x7d   : > { %923 = vmatprep.subr.mxu0 %v1352_v1 }
  0x7e   : > { %924 = vmatpush3.msra.mxu0 %v389_v8 }
  0x7f   : > { %925 = vmatprep.subr.mxu0 %v1352_v1 }
  0x80   : > { %926 = vmatpush3.msra.mxu0 %v388_v9 }
  0x81   : > { %927 = vmatprep.subr.mxu0 %v1352_v1 }
  0x82   : > { %928 = vmatpush3.msra.mxu0 %v387_v10 }
  0x83   : > { %929 = vmatprep.subr.mxu0 %v1352_v1 }
  0x84   : > { %930 = vmatpush3.msra.mxu0 %v386_v11 }
  0x85   : > { %931 = vmatprep.subr.mxu0 %v1352_v1 }
  0x86   : > { %932 = vmatpush3.msra.mxu0 %v385_v12 }
  0x87   : > { %933 = vmatprep.subr.mxu0 %v1352_v1 }
  0x88   : > { %934 = vmatpush3.msra.mxu0 %v384_v13 }
  0x89   : > { %935 = vmatprep.subr.mxu0 %v1352_v1 }
  0x8a   : > { %936 = vmatpush3.msra.mxu0 %v383_v14 }
  0x8b   : > { %937 = vmatprep.subr.mxu0 %v1352_v1 }
  0x8c   : > { %938 = vmatpush3.msra.mxu0 %v382_v15 }
  0x8d   : > { %939 = vmatprep.subr.mxu0 %v1352_v1 }
  0x8e   : > { %940 = vmatpush3.msra.mxu0 %v381_v16 }
  0x8f   : > { %942 = vmatmul.mubr.f32.vlgmr.msra.gmra.mxu0 %v380_v17 }
 0x14f   : > { %v470_v19 = vpop.f32.mrf.mxu0 }
 0x150   : > { %v471_v20 = vadd.f32 %v851_v18, %v470_v19 }
 0x151   : > { %v943_v21 = vpop.f32.mrf.mxu0 }
 0x152   : > { %474 = vst [vmem:[#allocation13] sm:$0xff] %v471_v20 }
 0x153 PF: > { %v481_v22 = vld [vmem:[%s1520_s19] sm:$0xf]  ;;  %v1354_v25 = vmov 0.0   ;;  %v1108_v26 = vld [vmem:[#allocation7 + $0x30] sm:$0xff]   ;;  %vm1355_vm1 = vmmov 0   ;;  %vm479_vm2 = vcmask 7168  }
 0x154   : > { %v1107_v23 = vld [vmem:[#allocation7 + $0x38] sm:$0xff]   ;;  %v595_v24 = vunpack.c.l.bf16 %v481_v22  ;;  %944 = vmatprep.subr.bf16.mxu0 %v1354_v25  ;;  %964 = vmatprep.subr.mxu1 %v1354_v25  ;;  %480 = vst.msk [vmem:[#allocation3] sm:$0xff] %vm479_vm2, %v1354_v25  ;;  %v1109_v27 = vld [vmem:[#allocation7 + $0x28] sm:$0xff]   ;;  %v1110_v28 = vld [vmem:[#allocation7 + $0x20] sm:$0xff]   ;;  %v1356_v30 = vmov 0   ;;  %s1357_s20 = smov [#allocation13]  }
 0x155   : > { %945 = vmatpush3.bf16.msra.mxu0 %v1107_v23  ;;  %960 = vmatprep.mubr.msk.bf16.mxu0 %vm1355_vm1, %v1354_v25  ;;  %v1111_v29 = vld [vmem:[#allocation7 + $0x18] sm:$0xff]   ;;  %v1112_v31 = vld [vmem:[#allocation7 + $0x10] sm:$0xff]   ;;  %v1113_v32 = vld [vmem:[#allocation7 + $0x8] sm:$0xff]   ;;  %s712_s30 = sshll.u32 %s1357_s20, 4  ;;  %p1043_p4 = scmp.eq.s32.totalorder %s1422_s27, 2  ;;  %s713_s30 = int_to_ptr.vmem [resolvable:$true] %s712_s30 }
 0x156   : > { %596 = vadd.xlane.f32.xlu0 %v595_v24  ;;  %946 = vmatprep.subr.bf16.mxu0 %v1354_v25  ;;  %v1114_v33 = vld [vmem:[#allocation7] sm:$0xff]   ;;  %v629_v35 = vld [vmem:[%s1531_s9 + $0x70] sm:$0xff]  ;;  %v628_v36 = vld [vmem:[%s1531_s9 + $0x68] sm:$0xff]  ;;  %s1251_s12 = scalar_lea.vmem %s713_s30, 128  ;;  %p1258_p1 = scmp.lt.s32.totalorder %s713_s30, %s713_s30 }
 0x157   : > { %996 = vmatprep.mubr.msk.f32.mxu1 %vm1355_vm1, %v1354_v25  ;;  %1106 = vset.pattern.permute.xlu0 %v1356_v30  ;;  %v630_v34 = vld [vmem:[%s1531_s9 + $0x78] sm:$0xff]  ;;  %v627_v37 = vld [vmem:[%s1531_s9 + $0x60] sm:$0xff]  ;;  %v625_v39 = vld [vmem:[%s1531_s9 + $0x50] sm:$0xff]  ;;  %p1252_p12 = scmp.ne.s32.totalorder %s713_s30, %s1251_s12  ;;  %p1259_p2 = scmp.lt.s32.totalorder %s1251_s12, %s1251_s12 }
 0x158   : > { %965 = vmatpush3.msra.mxu1 %v630_v34  ;;  %v626_v38 = vld [vmem:[%s1531_s9 + $0x58] sm:$0xff]  ;;  %v624_v40 = vld [vmem:[%s1531_s9 + $0x48] sm:$0xff]  ;;  %v623_v41 = vld [vmem:[%s1531_s9 + $0x40] sm:$0xff] }
 0x159   : > { %947 = vmatpush3.bf16.msra.mxu0 %v1108_v26  ;;  %966 = vmatprep.subr.mxu1 %v1354_v25  ;;  %v622_v42 = vld [vmem:[%s1531_s9 + $0x38] sm:$0xff]  ;;  %v621_v43 = vld [vmem:[%s1531_s9 + $0x30] sm:$0xff]  ;;  %v620_v44 = vld [vmem:[%s1531_s9 + $0x28] sm:$0xff]  ;;  %p1253_p11 = pnand %p1252_p12, %p1043_p4  ;;  %p1260_p3 = por %p1259_p2, %p1258_p1 }
 0x15a   : > { %948 = vmatprep.subr.bf16.mxu0 %v1354_v25  ;;  %967 = vmatpush3.msra.mxu1 %v629_v35  ;;  %v619_v45 = vld [vmem:[%s1531_s9 + $0x20] sm:$0xff]  ;;  %v618_v46 = vld [vmem:[%s1531_s9 + $0x18] sm:$0xff]  ;;  %v617_v47 = vld [vmem:[%s1531_s9 + $0x10] sm:$0xff] }
 0x15b   : > { %968 = vmatprep.subr.mxu1 %v1354_v25  ;;  %v616_v48 = vld [vmem:[%s1531_s9 + $0x8] sm:$0xff]  ;;  %v615_v54 = vld [vmem:[%s1531_s9] sm:$0xff]  ;;  %p1254_p13 = pneg %p1253_p11 }
 0x15c   : > { %969 = vmatpush3.msra.mxu1 %v628_v36  ;;  %v594_v49 = vld [vmem:[#allocation3] sm:$0xff]  ;;  %v614_v62 = vld [vmem:[#allocation13] sm:$0xff] }
 0x15d   : > { %949 = vmatpush3.bf16.msra.mxu0 %v1109_v27  ;;  %970 = vmatprep.subr.mxu1 %v1354_v25  ;;  %p1261_p6 = pnand %p1260_p3, %p1254_p13 }
 0x15e   : > { %950 = vmatprep.subr.bf16.mxu0 %v1354_v25  ;;  %971 = vmatpush3.msra.mxu1 %v627_v37 }
 0x15f   : > { %972 = vmatprep.subr.mxu1 %v1354_v25 }
 0x160   : > { %973 = vmatpush3.msra.mxu1 %v626_v38 }
 0x161   : > { %951 = vmatpush3.bf16.msra.mxu0 %v1110_v28  ;;  %974 = vmatprep.subr.mxu1 %v1354_v25 }
 0x162   : > { %952 = vmatprep.subr.bf16.mxu0 %v1354_v25  ;;  %975 = vmatpush3.msra.mxu1 %v625_v39 }
 0x163   : > { %976 = vmatprep.subr.mxu1 %v1354_v25 }
 0x164   : > { %977 = vmatpush3.msra.mxu1 %v624_v40 }
 0x165   : > { %953 = vmatpush3.bf16.msra.mxu0 %v1111_v29  ;;  %978 = vmatprep.subr.mxu1 %v1354_v25 }
 0x166   : > { %954 = vmatprep.subr.bf16.mxu0 %v1354_v25  ;;  %979 = vmatpush3.msra.mxu1 %v623_v41 }
 0x167   : > { %980 = vmatprep.subr.mxu1 %v1354_v25 }
 0x168   : > { %981 = vmatpush3.msra.mxu1 %v622_v42 }
 0x169   : > { %955 = vmatpush3.bf16.msra.mxu0 %v1112_v31  ;;  %982 = vmatprep.subr.mxu1 %v1354_v25 }
 0x16a   : > { %956 = vmatprep.subr.bf16.mxu0 %v1354_v25  ;;  %983 = vmatpush3.msra.mxu1 %v621_v43 }
 0x16b   : > { %984 = vmatprep.subr.mxu1 %v1354_v25 }
 0x16c   : > { %985 = vmatpush3.msra.mxu1 %v620_v44 }
 0x16d   : > { %957 = vmatpush3.bf16.msra.mxu0 %v1113_v32  ;;  %986 = vmatprep.subr.mxu1 %v1354_v25 }
 0x16e   : > { %958 = vmatprep.subr.bf16.mxu0 %v1354_v25  ;;  %987 = vmatpush3.msra.mxu1 %v619_v45 }
 0x16f   : > { %988 = vmatprep.subr.mxu1 %v1354_v25 }
 0x170   : > { %989 = vmatpush3.msra.mxu1 %v618_v46 }
 0x171   : > { %959 = vmatpush3.bf16.msra.mxu0 %v1114_v33  ;;  %990 = vmatprep.subr.mxu1 %v1354_v25 }
 0x172   : > { %991 = vmatpush3.msra.mxu1 %v617_v47 }
 0x173   : > { %992 = vmatprep.subr.mxu1 %v1354_v25 }
 0x174   : > { %961 = vmatmul.mubr.bf16.vlgmr.msra.gmra.mxu0 %v481_v22  ;;  %993 = vmatpush3.msra.mxu1 %v616_v48 }
 0x175   : > { %994 = vmatprep.subr.mxu1 %v1354_v25 }
 0x176   : > { %995 = vmatpush3.msra.mxu1 %v615_v54 }
 0x1df   : > { %v597_v50 = vpop.xlane.xlu0 %596 }
 0x1e0   : > { %v598_v51 = vadd.f32 %v597_v50, %v594_v49 }
 0x1e2   : > { %600 = vst.msk [vmem:[#allocation3] sm:$0xff] %vm479_vm2, %v598_v51 }
 0x1e9   : > { %v604_v52 = vld [vmem:[#allocation3] sm:$0xff] }
 0x1ea   : > { %v605_v53 = vmax.f32 %v604_v52, 1.0 }
 0x1ec   : > { %1115 = vrcp.f32 %v605_v53 }
 0x1f9   : > { %v1116_v55 = vpop.eup %1115 }
 0x1fa   : > { %610 = vperm.xlu0 %1106, %v1116_v55  }
 0x234   : > { %v586_v56 = vpop.f32.mrf.mxu0 }
 0x236   : > { %v962_v57 = vpop.f32.mrf.mxu0 }
 0x238   : > { %v589_v58 = vpop.f32.mrf.mxu0 }
 0x23a   : > { %v963_v59 = vpop.f32.mrf.mxu0 }
 0x275   : > { %v611_v60 = vpop.permute.xlu0 %610 }
 0x276   : > { %v613_v61 = vmul.f32 %v611_v60, %v586_v56 }
 0x278   : > { %997 = vmatmul.mubr.f32.vlgmr.msra.gmra.mxu1 %v613_v61 }
 0x338   : > { %v697_v63 = vpop.f32.mrf.mxu1 }
 0x339   : > { %v701_v0 = vadd.f32 %v697_v63, %v614_v62 }
 0x33a   : > { %v998_v1 = vpop.f32.mrf.mxu1 }
 0x33b   : > { %702 = vst [vmem:[#allocation13] sm:$0xff] %v701_v0 }
 0x33c   : > { %1264 = shalt.err (!%p1261_p6)
}
 0x33d   : > { %1016 = dma.vmem_to_hbm [thread:$0]  (%p1043_p4), %s713_s30, 128, %s1627_s6, [#allocation6]  }
 0x33e   : > { %1316 = dma.done.wait (%p1043_p4), [#allocation6], 128  }
 0x33f   : > { %1318 = vsyncadd (%p1043_p4), [#allocation6], 4294967168 }
 0x340 PF: > { %s24_s26 = sadd.s32 1, %s1341_s26   ;;  %s1645_s21 = smov %s1325_s22 }
 0x341   : > { %p21_p9 = scmp.ge.s32.totalorder %s24_s26, 5   ;;  %s1646_s22 = smov %s1329_s23 }
 0x342   : > { %s1647_s23 = smov %s1488_s16  ;;  %s1648_s24 = smov %s1337_s25 }
 0x343   : > { %s1649_s25 = smov %s1651_s10  ;;  %23 = sbr.rel (!%p21_p9) target bundleno = 11 (0xb), region = 121 }
 0x348   :  { %725 = vsyncpa [#allocation5], 1 }
 0x349   :  { %727 = vsyncpa [#allocation5 + $0x1], 1 }
 0x34a   :  { %728 = vsyncpa [#allocation8], 1 }
 0x34b   :  { %729 = vsyncpa [#allocation11], 1 }
 0x34c   :  { %731 = vsyncpa [#allocation11 + $0x1], 1 }
 0x34d   :  { %732 = vsyncpa [#allocation6], 1 }
 0x34e   :  { %734 = vsyncpa [#allocation6 + $0x1], 1 }

</bundles_post_ra>
